<compile_context>
chip_gen: v6e
topology: v6e:2x2x1
jax: 0.10.0
libtpu: 0.0.40
codegen_flags: <defaults>
</compile_context>

<pallas_src>
import functools
import math

import jax
import jax.numpy as jnp
from jax.experimental import pallas as pl
from jax.experimental.pallas import tpu as pltpu

LANE = 128
SUBLANE = 8


def _round_up(v, m):
    return (v + m - 1) // m * m


def _gnn_kernel(x_ref, s_ref, *refs, layer_dims, bt, n_pad, compute_dtype):
    """Fused GNN forward for one tile of `bt` batch elements.

    Layouts (node axis lane-dense, n_pad a multiple of 128):
      x_ref : [bt*G0, n_pad]        activations, batch-major / feature-minor rows
      s_ref : [n_pad, n_pad]        graph shift operator (compute dtype, zero padded)
      refs  : h_0, b_0, ..., h_{L-1}, b_{L-1}, o_ref, z_scr
        h_l   : [F_l, K_l*G_l]      taps, k-major / g-minor (compute dtype)
        b_l   : [F_l, 1]            bias (f32)
        o_ref : [bt*F_L, n_pad]     output tile (f32)
        z_scr : [bt, max_KG, n_pad] VMEM tap-stack scratch (compute dtype)
    """
    o_ref = refs[-2]
    z_scr = refs[-1]
    w_refs = refs[:-2]
    num_layers = len(layer_dims)

    s = s_ref[...]                                   # bf16, pre-cast on host
    x2 = x_ref[...]                                  # [bt*G0, n_pad] bf16

    for li, (K, G, F) in enumerate(layer_dims):
        h = w_refs[2 * li][...]                      # [F, K*G]  compute dtype
        b = w_refs[2 * li + 1][...]                  # [F, 1]    f32
        kg = K * G
        is_last = li == num_layers - 1

        # ---- graph-shift power chain, batch folded into sublane rows ------
        # z_k = x S^k as ONE [bt*G, Np] @ [Np, Np] MXU matmul per tap (f32
        # accumulate), streamed tap-by-tap into the VMEM scratch: no
        # jnp.concatenate temporaries, live memory ~2 taps + scratch.
        xk = x2
        z_scr[:, 0:G, :] = xk.reshape(bt, G, n_pad)
        for k in range(1, K):
            xk = jnp.dot(xk, s,
                         preferred_element_type=jnp.float32).astype(compute_dtype)
            z_scr[:, k * G:(k + 1) * G, :] = xk.reshape(bt, G, n_pad)

        # ---- single tap contraction per layer (depth K*G) ------------------
        # One batched MXU contraction replaces the old per-batch slice/concat
        # loop (bt tiny matmuls + bt*K relayouts).
        z = z_scr[:, 0:kg, :]                                   # [bt, K*G, Np]
        hb = jnp.broadcast_to(h, (bt, F, kg))                   # tiny, hoisted
        y = jnp.einsum('bfk,bkn->bfn', hb, z,
                       preferred_element_type=jnp.float32)      # [bt, F, Np] f32

        # Bias + sigma (ReLU) in f32 vregs (v5e VPU has no bf16 path).
        # Padded node lanes / padded batch rows hold max(bias, 0): harmless —
        # S's padded rows are zero so they never leak into valid columns, and
        # the wrapper slices them off.
        y = jnp.maximum(y + b[None, :, :], 0.0)

        if is_last:
            # Lane-dense, sublane-aligned (bt*F multiple of 8) unmasked store.
            o_ref[...] = y.reshape(bt * F, n_pad).astype(o_ref.dtype)
        else:
            # Activation stays vreg/VMEM resident between layers (no HBM trip).
            x2 = y.astype(compute_dtype).reshape(bt * F, n_pad)


def gnn_forward(x, gso, params, *, batch_tile=64, compute_dtype=jnp.bfloat16):
    """x: [B, G0, N], gso: [N, N], params: list of (h [F,K,G], b [F,1])."""
    B, G0, N = x.shape

    layer_dims = []
    flat_params = []
    g = G0
    for (w, bvec) in params:
        F, K, Gin = w.shape
        assert Gin == g, (Gin, g)
        layer_dims.append((K, Gin, F))
        # Host-side pre-cast of the taps (same flattening as torch reshape).
        flat_params.append(w.reshape(F, K * Gin).astype(compute_dtype))
        flat_params.append(bvec.astype(jnp.float32))
        g = F
    f_out = g
    max_kg = max(K * G for (K, G, _) in layer_dims)

    # Lane-dense node axis: pad N to a multiple of 128; S's padded rows/cols
    # are zero so the x @ S^k chain stays exact on valid columns.
    n_pad = _round_up(N, LANE)

    # Batch tile: multiple of 8 sublanes, sized so bt*G fills MXU rows
    # (~128 on v5e, ~256 on v6e/v7x), clamped so tiny batches stay small.
    # For large B this also yields b_pad//bt >= 2 grid steps (v7x megacore).
    bt = min(_round_up(batch_tile, SUBLANE), _round_up(B, SUBLANE))
    b_pad = _round_up(B, bt)
    grid = (b_pad // bt,)

    # Host-side layout plumbing + compute-dtype pre-cast (halves S/x DMA).
    s_p = (jnp.zeros((n_pad, n_pad), jnp.float32).at[:N, :N].set(gso)
           .astype(compute_dtype))
    x_p = (jnp.zeros((b_pad, G0, n_pad), jnp.float32).at[:B, :, :N].set(x)
           .astype(compute_dtype).reshape(b_pad * G0, n_pad))

    kernel = functools.partial(
        _gnn_kernel, layer_dims=tuple(layer_dims), bt=bt, n_pad=n_pad,
        compute_dtype=compute_dtype)

    def const_spec(shape):
        # Grid-invariant blocks (S, taps, bias): constant block index.
        return pl.BlockSpec(shape, lambda i: (0, 0))

    in_specs = [
        pl.BlockSpec((bt * G0, n_pad), lambda i: (i, 0)),   # x, per batch tile
        const_spec((n_pad, n_pad)),                         # S (resident)
    ]
    for p in flat_params:                                   # h_l, b_l (resident)
        in_specs.append(const_spec(p.shape))

    out = pl.pallas_call(
        kernel,
        out_shape=jax.ShapeDtypeStruct((b_pad * f_out, n_pad), jnp.float32),
        grid=grid,
        in_specs=in_specs,
        out_specs=pl.BlockSpec((bt * f_out, n_pad), lambda i: (i, 0)),
        scratch_shapes=[pltpu.VMEM((bt, max_kg, n_pad), compute_dtype)],
        compiler_params=pltpu.CompilerParams(
            dimension_semantics=("parallel",),
            vmem_limit_bytes=48 * 1024 * 1024),
    )(x_p, s_p, *flat_params)

    # XLA-side un-plumbing: [b_pad*F, n_pad] -> [B, F, N].
    return out.reshape(b_pad, f_out, n_pad)[:B, :, :N]


def init_gnn_params(key, l, k, f):
    """Deterministic init matching GraphFilter.reset_parameters()."""
    params = []
    for layer in range(l):
        f_in, f_out, kk = f[layer], f[layer + 1], k[layer]
        stdv = 1.0 / math.sqrt(f_in * kk)
        key, wk, bk = jax.random.split(key, 3)
        w = jax.random.uniform(wk, (f_out, kk, f_in), jnp.float32, -stdv, stdv)
        b = jax.random.uniform(bk, (f_out, 1), jnp.float32, -stdv, stdv)
        params.append((w, b))
    return params


# --- pure-JAX f32 reference (mirrors FilterFunction / GNN) for validation ---
def _filter_reference(h, s, x, b):
    F, K, G = h.shape
    zs = [x]
    xk = x
    for _ in range(1, K):
        xk = jnp.einsum('bgn,nm->bgm', xk, s)
        zs.append(xk)
    z = jnp.stack(zs, axis=1)                       # [B, K, G, N]
    return jnp.einsum('fkg,bkgn->bfn', h, z) + b


def gnn_reference(x, gso, params):
    for (w, b) in params:
        x = jnp.maximum(_filter_reference(w, gso, x, b), 0.0)
    return x


if __name__ == "__main__":
    key = jax.random.PRNGKey(0)
    kgso, kx, kp = jax.random.split(key, 3)

    # Small, module-consistent shapes.
    B, N = 2, 16                 # batch, number of graph nodes
    l = 2                        # number of layers
    k = [3, 3]                   # filter taps per layer
    f = [4, 8, 4]                # feature dims per layer (f_in ... f_out)

    # Deterministic symmetric GSO, scaled for stability.
    A = jax.random.uniform(kgso, (N, N), jnp.float32)
    A = (A + A.T) * 0.5
    gso = A / jnp.float32(N)

    x = jax.random.normal(kx, (B, f[0], N), jnp.float32)
    params = init_gnn_params(kp, l, k, f)

    y = gnn_forward(x, gso, params)
    jax.block_until_ready(y)
    assert y.shape == (B, f[-1], N), y.shape

    # Validate bf16-MXU / f32-accumulation kernel against the f32 reference.
    # (bf16 re-quantization compounds with K/L; re-check tolerance at prod sizes
    # or pass compute_dtype=jnp.float32.)
    y_ref = gnn_reference(x, gso, params)
    err = float(jnp.max(jnp.abs(y - y_ref)))
    assert err < 5e-2, err

    print("KERNEL_OK")
</pallas_src>

<mosaic_0001>
module attributes {stable_mosaic.version = 11 : i64} {
  func.func @_gnn_kernel(%arg0: i32, %arg1: memref<32x128xbf16, #tpu.memory_space<vmem>>, %arg2: memref<128x128xbf16, #tpu.memory_space<vmem>>, %arg3: memref<8x12xbf16, #tpu.memory_space<vmem>>, %arg4: memref<8x1xf32, #tpu.memory_space<vmem>>, %arg5: memref<4x24xbf16, #tpu.memory_space<vmem>>, %arg6: memref<4x1xf32, #tpu.memory_space<vmem>>, %arg7: memref<32x128xf32, #tpu.memory_space<vmem>>, %arg8: memref<8x24x128xbf16, #tpu.memory_space<vmem>>) attributes {dimension_semantics = [#tpu.dimension_semantics<parallel>], iteration_bounds = array<i64: 1>, scalar_prefetch = 0 : i64, scratch_operands = 1 : i64, tpu.core_type = #tpu.core_type<tc>, window_params = [{transform_indices = @transform_0, window_bounds = array<i64: 32, 128>}, {pipeline_mode = #tpu.pipeline_mode<synchronous>, transform_indices = @transform_1, window_bounds = array<i64: 128, 128>}, {pipeline_mode = #tpu.pipeline_mode<synchronous>, transform_indices = @transform_2, window_bounds = array<i64: 8, 12>}, {pipeline_mode = #tpu.pipeline_mode<synchronous>, transform_indices = @transform_3, window_bounds = array<i64: 8, 1>}, {pipeline_mode = #tpu.pipeline_mode<synchronous>, transform_indices = @transform_4, window_bounds = array<i64: 4, 24>}, {pipeline_mode = #tpu.pipeline_mode<synchronous>, transform_indices = @transform_5, window_bounds = array<i64: 4, 1>}, {transform_indices = @transform_6, window_bounds = array<i64: 32, 128>}]} {
    %c0 = arith.constant 0 : index
    %c0_0 = arith.constant 0 : index
    %0 = vector.load %arg2[%c0, %c0_0] : memref<128x128xbf16, #tpu.memory_space<vmem>>, vector<128x128xbf16>
    %c0_1 = arith.constant 0 : index
    %c0_2 = arith.constant 0 : index
    %1 = vector.load %arg1[%c0_1, %c0_2] : memref<32x128xbf16, #tpu.memory_space<vmem>>, vector<32x128xbf16>
    %c0_3 = arith.constant 0 : index
    %c0_4 = arith.constant 0 : index
    %2 = vector.load %arg3[%c0_3, %c0_4] : memref<8x12xbf16, #tpu.memory_space<vmem>>, vector<8x12xbf16>
    %c0_5 = arith.constant 0 : index
    %c0_6 = arith.constant 0 : index
    %3 = vector.load %arg4[%c0_5, %c0_6] : memref<8x1xf32, #tpu.memory_space<vmem>>, vector<8x1xf32>
    %4 = vector.shape_cast %1 : vector<32x128xbf16> to vector<8x4x128xbf16>
    %c0_7 = arith.constant 0 : index
    %c0_8 = arith.constant 0 : index
    %c0_9 = arith.constant 0 : index
    %5 = vector.load %arg8[%c0_7, %c0_8, %c0_9] : memref<8x24x128xbf16, #tpu.memory_space<vmem>>, vector<8x4x128xbf16>
    tpu.vector_store %arg8[%c0_7, %c0_8, %c0_9], %4 {strides = array<i32>} : memref<8x24x128xbf16, #tpu.memory_space<vmem>>, vector<8x4x128xbf16>,
    %cst = arith.constant dense<0.000000e+00> : vector<32x128xf32>
    %6 = tpu.matmul %1, %0, %cst {dimension_numbers = #tpu.dot_dimension_numbers<[1], [0], [0], [1], [0, 0, 1, 1], [], []>} : vector<32x128xbf16>, vector<128x128xbf16>, vector<32x128xf32> -> vector<32x128xf32>
    %7 = arith.truncf %6 : vector<32x128xf32> to vector<32x128xbf16>
    %8 = vector.shape_cast %7 : vector<32x128xbf16> to vector<8x4x128xbf16>
    %c0_10 = arith.constant 0 : index
    %c4 = arith.constant 4 : index
    %c0_11 = arith.constant 0 : index
    %9 = vector.load %arg8[%c0_10, %c4, %c0_11] : memref<8x24x128xbf16, #tpu.memory_space<vmem>>, vector<8x4x128xbf16>
    tpu.vector_store %arg8[%c0_10, %c4, %c0_11], %8 {strides = array<i32>} : memref<8x24x128xbf16, #tpu.memory_space<vmem>>, vector<8x4x128xbf16>,
    %cst_12 = arith.constant dense<0.000000e+00> : vector<32x128xf32>
    %10 = tpu.matmul %7, %0, %cst_12 {dimension_numbers = #tpu.dot_dimension_numbers<[1], [0], [0], [1], [0, 0, 1, 1], [], []>} : vector<32x128xbf16>, vector<128x128xbf16>, vector<32x128xf32> -> vector<32x128xf32>
    %11 = arith.truncf %10 : vector<32x128xf32> to vector<32x128xbf16>
    %12 = vector.shape_cast %11 : vector<32x128xbf16> to vector<8x4x128xbf16>
    %c0_13 = arith.constant 0 : index
    %c8 = arith.constant 8 : index
    %c0_14 = arith.constant 0 : index
    %13 = vector.load %arg8[%c0_13, %c8, %c0_14] : memref<8x24x128xbf16, #tpu.memory_space<vmem>>, vector<8x4x128xbf16>
    tpu.vector_store %arg8[%c0_13, %c8, %c0_14], %12 {strides = array<i32>} : memref<8x24x128xbf16, #tpu.memory_space<vmem>>, vector<8x4x128xbf16>,
    %c0_15 = arith.constant 0 : index
    %c0_16 = arith.constant 0 : index
    %c0_17 = arith.constant 0 : index
    %14 = vector.load %arg8[%c0_15, %c0_16, %c0_17] : memref<8x24x128xbf16, #tpu.memory_space<vmem>>, vector<8x12x128xbf16>
    %15 = vector.shape_cast %2 : vector<8x12xbf16> to vector<1x8x12xbf16>
    %16 = vector.broadcast %15 : vector<1x8x12xbf16> to vector<8x8x12xbf16>
    "tpu.trace_start"() <{level = 10 : i32, message = "bfk,bkn->bfn"}> : () -> ()
    %cst_18 = arith.constant dense<0.000000e+00> : vector<8x8x128xf32>
    %17 = tpu.matmul %16, %14, %cst_18 {dimension_numbers = #tpu.dot_dimension_numbers<[2], [1], [1], [2], [0, 0, 0, 1, 1, 2], [0], [0]>} : vector<8x8x12xbf16>, vector<8x12x128xbf16>, vector<8x8x128xf32> -> vector<8x8x128xf32>
    "tpu.trace_stop"() : () -> ()
    %18 = vector.shape_cast %3 : vector<8x1xf32> to vector<1x8x1xf32>
    %19 = vector.broadcast %18 : vector<1x8x1xf32> to vector<8x8x128xf32>
    %20 = arith.addf %17, %19 : vector<8x8x128xf32>
    %cst_19 = arith.constant 0.000000e+00 : f32
    %21 = vector.broadcast %cst_19 : f32 to vector<8x8x128xf32>
    %22 = arith.maximumf %20, %21 : vector<8x8x128xf32>
    %23 = arith.truncf %22 : vector<8x8x128xf32> to vector<8x8x128xbf16>
    %24 = vector.shape_cast %23 : vector<8x8x128xbf16> to vector<64x128xbf16>
    %c0_20 = arith.constant 0 : index
    %c0_21 = arith.constant 0 : index
    %25 = vector.load %arg5[%c0_20, %c0_21] : memref<4x24xbf16, #tpu.memory_space<vmem>>, vector<4x24xbf16>
    %c0_22 = arith.constant 0 : index
    %c0_23 = arith.constant 0 : index
    %26 = vector.load %arg6[%c0_22, %c0_23] : memref<4x1xf32, #tpu.memory_space<vmem>>, vector<4x1xf32>
    %27 = vector.shape_cast %24 : vector<64x128xbf16> to vector<8x8x128xbf16>
    %c0_24 = arith.constant 0 : index
    %c0_25 = arith.constant 0 : index
    %c0_26 = arith.constant 0 : index
    %28 = vector.load %arg8[%c0_24, %c0_25, %c0_26] : memref<8x24x128xbf16, #tpu.memory_space<vmem>>, vector<8x8x128xbf16>
    tpu.vector_store %arg8[%c0_24, %c0_25, %c0_26], %27 {strides = array<i32>} : memref<8x24x128xbf16, #tpu.memory_space<vmem>>, vector<8x8x128xbf16>,
    %cst_27 = arith.constant dense<0.000000e+00> : vector<64x128xf32>
    %29 = tpu.matmul %24, %0, %cst_27 {dimension_numbers = #tpu.dot_dimension_numbers<[1], [0], [0], [1], [0, 0, 1, 1], [], []>} : vector<64x128xbf16>, vector<128x128xbf16>, vector<64x128xf32> -> vector<64x128xf32>
    %30 = arith.truncf %29 : vector<64x128xf32> to vector<64x128xbf16>
    %31 = vector.shape_cast %30 : vector<64x128xbf16> to vector<8x8x128xbf16>
    %c0_28 = arith.constant 0 : index
    %c8_29 = arith.constant 8 : index
    %c0_30 = arith.constant 0 : index
    %32 = vector.load %arg8[%c0_28, %c8_29, %c0_30] : memref<8x24x128xbf16, #tpu.memory_space<vmem>>, vector<8x8x128xbf16>
    tpu.vector_store %arg8[%c0_28, %c8_29, %c0_30], %31 {strides = array<i32>} : memref<8x24x128xbf16, #tpu.memory_space<vmem>>, vector<8x8x128xbf16>,
    %cst_31 = arith.constant dense<0.000000e+00> : vector<64x128xf32>
    %33 = tpu.matmul %30, %0, %cst_31 {dimension_numbers = #tpu.dot_dimension_numbers<[1], [0], [0], [1], [0, 0, 1, 1], [], []>} : vector<64x128xbf16>, vector<128x128xbf16>, vector<64x128xf32> -> vector<64x128xf32>
    %34 = arith.truncf %33 : vector<64x128xf32> to vector<64x128xbf16>
    %35 = vector.shape_cast %34 : vector<64x128xbf16> to vector<8x8x128xbf16>
    %c0_32 = arith.constant 0 : index
    %c16 = arith.constant 16 : index
    %c0_33 = arith.constant 0 : index
    %36 = vector.load %arg8[%c0_32, %c16, %c0_33] : memref<8x24x128xbf16, #tpu.memory_space<vmem>>, vector<8x8x128xbf16>
    tpu.vector_store %arg8[%c0_32, %c16, %c0_33], %35 {strides = array<i32>} : memref<8x24x128xbf16, #tpu.memory_space<vmem>>, vector<8x8x128xbf16>,
    %c0_34 = arith.constant 0 : index
    %c0_35 = arith.constant 0 : index
    %c0_36 = arith.constant 0 : index
    %37 = vector.load %arg8[%c0_34, %c0_35, %c0_36] : memref<8x24x128xbf16, #tpu.memory_space<vmem>>, vector<8x24x128xbf16>
    %38 = vector.shape_cast %25 : vector<4x24xbf16> to vector<1x4x24xbf16>
    %39 = vector.broadcast %38 : vector<1x4x24xbf16> to vector<8x4x24xbf16>
    "tpu.trace_start"() <{level = 10 : i32, message = "bfk,bkn->bfn"}> : () -> ()
    %cst_37 = arith.constant dense<0.000000e+00> : vector<8x4x128xf32>
    %40 = tpu.matmul %39, %37, %cst_37 {dimension_numbers = #tpu.dot_dimension_numbers<[2], [1], [1], [2], [0, 0, 0, 1, 1, 2], [0], [0]>} : vector<8x4x24xbf16>, vector<8x24x128xbf16>, vector<8x4x128xf32> -> vector<8x4x128xf32>
    "tpu.trace_stop"() : () -> ()
    %41 = vector.shape_cast %26 : vector<4x1xf32> to vector<1x4x1xf32>
    %42 = vector.broadcast %41 : vector<1x4x1xf32> to vector<8x4x128xf32>
    %43 = arith.addf %40, %42 : vector<8x4x128xf32>
    %cst_38 = arith.constant 0.000000e+00 : f32
    %44 = vector.broadcast %cst_38 : f32 to vector<8x4x128xf32>
    %45 = arith.maximumf %43, %44 : vector<8x4x128xf32>
    %46 = vector.shape_cast %45 : vector<8x4x128xf32> to vector<32x128xf32>
    %c0_39 = arith.constant 0 : index
    %c0_40 = arith.constant 0 : index
    %47 = vector.load %arg7[%c0_39, %c0_40] : memref<32x128xf32, #tpu.memory_space<vmem>>, vector<32x128xf32>
    tpu.vector_store %arg7[%c0_39, %c0_40], %46 {strides = array<i32>} : memref<32x128xf32, #tpu.memory_space<vmem>>, vector<32x128xf32>,
    return
  }
  func.func @transform_0(%arg0: i32) -> (i32, i32) {
    %c0_i32 = arith.constant 0 : i32
    %c0_i32_0 = arith.constant 0 : i32
    return %arg0, %c0_i32 : i32, i32
  }
  func.func @transform_1(%arg0: i32) -> (i32, i32) {
    %c0_i32 = arith.constant 0 : i32
    %c0_i32_0 = arith.constant 0 : i32
    %c0_i32_1 = arith.constant 0 : i32
    return %c0_i32, %c0_i32_0 : i32, i32
  }
  func.func @transform_2(%arg0: i32) -> (i32, i32) {
    %c0_i32 = arith.constant 0 : i32
    %c0_i32_0 = arith.constant 0 : i32
    %c0_i32_1 = arith.constant 0 : i32
    return %c0_i32, %c0_i32_0 : i32, i32
  }
  func.func @transform_3(%arg0: i32) -> (i32, i32) {
    %c0_i32 = arith.constant 0 : i32
    %c0_i32_0 = arith.constant 0 : i32
    %c0_i32_1 = arith.constant 0 : i32
    return %c0_i32, %c0_i32_0 : i32, i32
  }
  func.func @transform_4(%arg0: i32) -> (i32, i32) {
    %c0_i32 = arith.constant 0 : i32
    %c0_i32_0 = arith.constant 0 : i32
    %c0_i32_1 = arith.constant 0 : i32
    return %c0_i32, %c0_i32_0 : i32, i32
  }
  func.func @transform_5(%arg0: i32) -> (i32, i32) {
    %c0_i32 = arith.constant 0 : i32
    %c0_i32_0 = arith.constant 0 : i32
    %c0_i32_1 = arith.constant 0 : i32
    return %c0_i32, %c0_i32_0 : i32, i32
  }
  func.func @transform_6(%arg0: i32) -> (i32, i32) {
    %c0_i32 = arith.constant 0 : i32
    %c0_i32_0 = arith.constant 0 : i32
    return %arg0, %c0_i32 : i32, i32
  }
}

</mosaic_0001>

<bundles_post_ra>
// kernel: tpu_custom_call.1
= control target key start
LH: loop header
LB: loop body
LE: loop exit
PB: predicated region body
PF: predicated region fallthrough
CT: control target
= control target key end

     0   :  { %11 = vsyncpa [#allocation4], 0  ;;  %s2386_s0 = inlined_call_operand.hbm [shape: bf16[32,128], index: 0, kind: input, shape index: {}]   ;;  %s2387_s1 = inlined_call_operand.hbm [shape: bf16[128,128], index: 1, kind: input, shape index: {}]   ;;  %s2388_s2 = inlined_call_operand.vmem [shape: bf16[8,12], index: 2, kind: input, shape index: {}]   ;;  %s2389_s3 = inlined_call_operand.vmem [shape: f32[8,1], index: 3, kind: input, shape index: {}]   ;;  %s2390_s4 = inlined_call_operand.vmem [shape: bf16[4,24], index: 4, kind: input, shape index: {}]   ;;  %s2391_s5 = inlined_call_operand.vmem [shape: f32[4,1], index: 5, kind: input, shape index: {}]   ;;  %s2392_s6 = inlined_call_operand.hbm [shape: f32[32,128], index: 6, kind: output, shape index: {}]  }
   0x1   :  { %12 = vsyncpa [#allocation7], 0 }
   0x2   :  { %13 = vsyncpa [#allocation5], 0  ;;  %s2127_s21 = smov [#allocation3]  }
   0x3   :  { %s19_s22 = sshll.u32 %s2127_s21, 4  ;;  %s20_s22 = int_to_ptr.vmem [resolvable:$true] %s19_s22 }
   0x4   :  { %s2069_s23 = scalar_lea.vmem %s20_s22, 256  ;;  %p2074_p1 = scmp.lt.s32.totalorder %s20_s22, %s20_s22 }
   0x5   :  { %p2070_p0 = scmp.ne.s32.totalorder %s20_s22, %s2069_s23  ;;  %p2075_p2 = scmp.lt.s32.totalorder %s2069_s23, %s2069_s23 }
   0x7   :  { %p2076_p3 = por %p2075_p2, %p2074_p1 }
   0x9   :  { %p2077_p4 = pnand %p2076_p3, %p2070_p0 }
   0xb   :  { %2080 = shalt.err (!%p2077_p4)
}
   0xc   :  { %s2128_s24 = smov 64   ;;  %s2129_s25 = smov 4  }
   0xd   :  { %25 = dma.hbm_to_vmem [thread:$0]  %s2386_s0, 256, %s20_s22, [#allocation4], %s2128_s24, %s2128_s24, %s2129_s25  }
   0xe   :  { %s2130_s28 = smov [#allocation6]  }
   0xf   :  { %s31_s29 = sshll.u32 %s2130_s28, 4  ;;  %s32_s29 = int_to_ptr.vmem [resolvable:$true] %s31_s29 }
  0x10   :  { %s2089_s30 = scalar_lea.vmem %s32_s29, 1024  ;;  %p2094_p6 = scmp.lt.s32.totalorder %s32_s29, %s32_s29 }
  0x11   :  { %p2090_p5 = scmp.ne.s32.totalorder %s32_s29, %s2089_s30  ;;  %p2095_p7 = scmp.lt.s32.totalorder %s2089_s30, %s2089_s30 }
  0x13   :  { %p2096_p8 = por %p2095_p7, %p2094_p6 }
  0x15   :  { %p2097_p9 = pnand %p2096_p8, %p2090_p5 }
  0x17   :  { %2100 = shalt.err (!%p2097_p9)
}
  0x18   :  { %37 = dma.hbm_to_vmem [thread:$0]  %s2387_s1, 1024, %s32_s29, [#allocation7], %s2128_s24, %s2128_s24, %s2129_s25  }
  0x19   :  { %2121 = dma.done.wait [#allocation4], 256  }
  0x1a   :  { %2122 = vsyncadd [#allocation4], 4294967040 }
  0x1b   :  { %2123 = dma.done.wait [#allocation7], 1024  }
  0x1c   :  { %2124 = vsyncadd [#allocation7], 4294966272  ;;  %v2131_v0 = vmov 1983009808   ;;  %v82_v2 = vlaneseq  ;;  %v2179_v3 = vld [vmem:[#allocation6 + $0x38] sm:$0xff]   ;;  %v2181_v4 = vld [vmem:[#allocation6 + $0x30] sm:$0xff]  }
  0x1d   :  { %v80_v1 = vunpack.c.l.s4 %v2131_v0  ;;  %1817 = vmatprep.subr.bf16.mxu0 %v2179_v3  ;;  %1837 = vmatprep.subr.bf16.mxu1 %v2179_v3  ;;  %v2188_v7 = vld [vmem:[#allocation6 + $0x28] sm:$0xff]   ;;  %v2194_v9 = vld [vmem:[#allocation6 + $0x20] sm:$0xff]   ;;  %v69_v10 = vld [vmem:[#allocation3] sm:$0xf]  ;;  %v2132_v48 = vmov 0.0   ;;  %vm2133_vm0 = vmmov 0  }
  0x1e   :  { %v83_v6 = vshrl.u32 %v82_v2, 7  ;;  %1818 = vmatpush3.bf16.msra.mxu0 %v2179_v3  ;;  %1838 = vmatpush3.bf16.msra.mxu1 %v2179_v3  ;;  %v70_v11 = vld [vmem:[#allocation3 + $0x4] sm:$0xf]  ;;  %v71_v12 = vld [vmem:[#allocation3 + $0x8] sm:$0xf]  ;;  %v2217_v25 = vld [vmem:[#allocation6 + $0x8] sm:$0xff]  }
  0x1f   :  { %v81_v5 = vunpack.c.0.s8 %v80_v1  ;;  %1819 = vmatprep.subr.bf16.mxu0 %v2181_v4  ;;  %1839 = vmatprep.subr.bf16.mxu1 %v2181_v4  ;;  %1619 = vst.sshfl [vmem:[#allocation2] sm:$0x3 pattern:$0x76325410] %v69_v10  ;;  %v1623_v15 = vcombine.low %v69_v10, %v70_v11  ;;  %v72_v16 = vld [vmem:[#allocation3 + $0xc] sm:$0xf] }
  0x20   :  { %1620 = vst.sshfl [vmem:[#allocation2 + $0x18] sm:$0x3 pattern:$0x76325410] %v70_v11  ;;  %v2205_v22 = vld [vmem:[#allocation6 + $0x18] sm:$0xff]   ;;  %v2211_v24 = vld [vmem:[#allocation6 + $0x10] sm:$0xff]   ;;  %v1624_v27 = vcombine.low %v71_v12, %v72_v16 }
  0x21   :  { %v2191_v8 = vsub.s32 %v81_v5, %v83_v6  ;;  %1621 = vst.sshfl [vmem:[#allocation2 + $0x30] sm:$0x3 pattern:$0x76325410] %v71_v12  ;;  %1833 = vmatprep.mubr.bf16.mxu0 %v1623_v15  ;;  %v2223_v26 = vld [vmem:[#allocation6] sm:$0xff]   ;;  %v74_v49 = vld [vmem:[%s2389_s3] sm:$0xff] }
  0x22   :  { %1820 = vmatpush3.bf16.msra.mxu0 %v2181_v4  ;;  %1840 = vmatpush3.bf16.msra.mxu1 %v2181_v4  ;;  %1622 = vst.sshfl [vmem:[#allocation2 + $0x48] sm:$0x3 pattern:$0x76325410] %v72_v16  ;;  %v2134_v50 = vmov 0   ;;  %vm483_vm1 = vcmask 1045504  }
  0x23   :  { %1821 = vmatprep.subr.bf16.mxu0 %v2188_v7  ;;  %1841 = vmatprep.subr.bf16.mxu1 %v2188_v7  ;;  %v85_v13 = vrot.slane %v69_v10, %v2191_v8  ;;  %v93_v14 = vrot.slane %v70_v11, %v2191_v8  ;;  %v101_v17 = vrot.slane %v71_v12, %v2191_v8  ;;  %v880_v51 = vld [vmem:[%s2391_s5] sm:$0xf]  ;;  %vm479_vm2 = vcmask 97280  }
  0x24   :  { %v109_v18 = vrot.slane %v72_v16, %v2191_v8  ;;  %2028 = vset.pattern.permute.xlu0 %v2134_v50  ;;  %v73_v12 = vld [vmem:[%s2388_s2] sm:$0xf]  ;;  %vm1165_vm3 = vcmask 1043456   ;;  %vm1161_vm4 = vcmask 195584  }
  0x25   :  { %v86_v19 = vcombine.high %v85_v13, %v85_v13  ;;  %v94_v20 = vcombine.high %v93_v14, %v93_v14  ;;  %v102_v21 = vcombine.high %v101_v17, %v101_v17  ;;  %471 = vperm.xlu0 %2028, %v74_v49  }
  0x26   :  { %1822 = vmatpush3.bf16.msra.mxu0 %v2188_v7  ;;  %v110_v23 = vcombine.high %v109_v18, %v109_v18  ;;  %1842 = vmatpush3.bf16.msra.mxu1 %v2188_v7 }
  0x27   :  { %1823 = vmatprep.subr.bf16.mxu0 %v2194_v9  ;;  %120 = vst [vmem:[#allocation2 + $0xc] sm:$0x3] %v86_v19  ;;  %122 = vst [vmem:[#allocation2 + $0x24] sm:$0x3] %v94_v20  ;;  %1843 = vmatprep.subr.bf16.mxu1 %v2194_v9 }
  0x28   :  { %124 = vst [vmem:[#allocation2 + $0x3c] sm:$0x3] %v102_v21  ;;  %126 = vst [vmem:[#allocation2 + $0x54] sm:$0x3] %v110_v23 }
  0x29   :  { %1149 = vperm.xlu0 %2028, %v880_v51  }
  0x2a   :  { %1824 = vmatpush3.bf16.msra.mxu0 %v2194_v9  ;;  %1844 = vmatpush3.bf16.msra.mxu1 %v2194_v9 }
  0x2b   :  { %1825 = vmatprep.subr.bf16.mxu0 %v2205_v22  ;;  %1845 = vmatprep.subr.bf16.mxu1 %v2205_v22 }
  0x2e   :  { %1826 = vmatpush3.bf16.msra.mxu0 %v2205_v22  ;;  %1846 = vmatpush3.bf16.msra.mxu1 %v2205_v22 }
  0x2f   :  { %1827 = vmatprep.subr.bf16.mxu0 %v2211_v24  ;;  %1847 = vmatprep.subr.bf16.mxu1 %v2211_v24 }
  0x32   :  { %1828 = vmatpush3.bf16.msra.mxu0 %v2211_v24  ;;  %1848 = vmatpush3.bf16.msra.mxu1 %v2211_v24 }
  0x33   :  { %1829 = vmatprep.subr.bf16.mxu0 %v2217_v25  ;;  %1849 = vmatprep.subr.bf16.mxu1 %v2217_v25 }
  0x36   :  { %1830 = vmatpush3.bf16.msra.mxu0 %v2217_v25  ;;  %1850 = vmatpush3.bf16.msra.mxu1 %v2217_v25 }
  0x37   :  { %1831 = vmatprep.subr.bf16.mxu0 %v2223_v26  ;;  %1851 = vmatprep.subr.bf16.mxu1 %v2223_v26 }
  0x3a   :  { %1832 = vmatpush3.bf16.msra.mxu0 %v2223_v26  ;;  %1852 = vmatpush3.bf16.msra.mxu1 %v2223_v26 }
  0x3b   :  { %1857 = vmatprep.subr.bf16.mxu0 %v2132_v48  ;;  %1863 = vmatprep.subr.bf16.mxu1 %v2132_v48 }
  0x3d   :  { %1834 = vmatmul.mubr.bf16.vlgmr.msra.gmra.mxu0 %v1624_v27 }
  0x3e   :  { %1859 = vmatprep.mubr.msk.bf16.mxu0 %vm2133_vm0, %v2132_v48 }
  0xfd   :  { %v1835_v28 = vpop.f32.mrf.mxu0 }
  0xff   :  { %v217_v29 = vpop.f32.mrf.mxu0 }
 0x101   :  { %v1836_v30 = vpop.f32.mrf.mxu0 }
 0x102   :  { %v233_v31 = vpack.c.bf16 %v1836_v30, %v1835_v28  ;;  %v1634_v32 = vpack.c.bf16 %v1836_v30, %v1836_v30 }
 0x103   :  { %v220_v33 = vpop.f32.mrf.mxu0 }
 0x104   :  { %v260_v34 = vrot.slane %v233_v31, %v2191_v8  ;;  %v267_v35 = vrot.slane %v1634_v32, %v2191_v8  ;;  %v1633_v36 = vpack.c.bf16 %v220_v33, %v220_v33  ;;  %v232_v37 = vpack.c.bf16 %v220_v33, %v217_v29 }
 0x106   :  { %v302_v38 = vcombine.low %v260_v34, %v260_v34  ;;  %v1637_v39 = vcombine.high %v260_v34, %v260_v34  ;;  %v318_v40 = vcombine.low %v267_v35, %v267_v35  ;;  %v1638_v41 = vcombine.high %v267_v35, %v267_v35  ;;  %1853 = vmatprep.mubr.bf16.mxu1 %v232_v37 }
 0x107   :  { %v250_v42 = vrot.slane %v1633_v36, %v2191_v8  ;;  %v243_v43 = vrot.slane %v232_v37, %v2191_v8  ;;  %1854 = vmatmul.mubr.bf16.vlgmr.msra.gmra.mxu1 %v233_v31 }
 0x108   :  { %1643 = vst.sshfl [vmem:[#allocation2 + $0x30] sm:$0x30 pattern:$0x76325410] %v302_v38  ;;  %1865 = vmatprep.mubr.msk.bf16.mxu1 %vm2133_vm0, %v2132_v48 }
 0x109   :  { %1644 = vst.sshfl [vmem:[#allocation2 + $0x3c] sm:$0x30 pattern:$0x76325410] %v1637_v39  ;;  %v286_v44 = vcombine.low %v250_v42, %v250_v42  ;;  %v1636_v45 = vcombine.high %v250_v42, %v250_v42  ;;  %v270_v46 = vcombine.low %v243_v43, %v243_v43  ;;  %v1635_v47 = vcombine.high %v243_v43, %v243_v43 }
 0x10a   :  { %1645 = vst.sshfl [vmem:[#allocation2 + $0x48] sm:$0x30 pattern:$0x76325410] %v318_v40 }
 0x10b   :  { %1646 = vst.sshfl [vmem:[#allocation2 + $0x54] sm:$0x30 pattern:$0x76325410] %v1638_v41 }
 0x10c   :  { %1641 = vst.sshfl [vmem:[#allocation2 + $0x18] sm:$0x30 pattern:$0x76325410] %v286_v44 }
 0x10d   :  { %1642 = vst.sshfl [vmem:[#allocation2 + $0x24] sm:$0x30 pattern:$0x76325410] %v1636_v45 }
 0x10e   :  { %1639 = vst.sshfl [vmem:[#allocation2] sm:$0x30 pattern:$0x76325410] %v270_v46 }
 0x10f   :  { %1640 = vst.sshfl [vmem:[#allocation2 + $0xc] sm:$0x30 pattern:$0x76325410] %v1635_v47 }
 0x1c7   :  { %v1855_v52 = vpop.f32.mrf.mxu1 }
 0x1c9   :  { %v384_v53 = vpop.f32.mrf.mxu1 }
 0x1cb   :  { %v1856_v54 = vpop.f32.mrf.mxu1 }
 0x1cc   :  { %v400_v55 = vpack.c.bf16 %v1856_v54, %v1855_v52  ;;  %v1648_v56 = vpack.c.bf16 %v1856_v54, %v1856_v54 }
 0x1cd   :  { %v387_v57 = vpop.f32.mrf.mxu1 }
 0x1ce   :  { %v427_v58 = vrot.slane %v400_v55, %v2191_v8  ;;  %v434_v59 = vrot.slane %v1648_v56, %v2191_v8  ;;  %1651 = vst.sshfl [vmem:[#allocation2 + $0x34] sm:$0x3 pattern:$0x76325410] %v400_v55  ;;  %v399_v60 = vpack.c.bf16 %v387_v57, %v384_v53  ;;  %v1647_v61 = vpack.c.bf16 %v387_v57, %v387_v57 }
 0x1cf   :  { %1652 = vst.sshfl [vmem:[#allocation2 + $0x4c] sm:$0x3 pattern:$0x76325410] %v1648_v56 }
 0x1d0   :  { %v435_v62 = vcombine.high %v427_v58, %v427_v58  ;;  %v436_v63 = vcombine.high %v434_v59, %v434_v59  ;;  %v410_v0 = vrot.slane %v399_v60, %v2191_v8  ;;  %v417_v1 = vrot.slane %v1647_v61, %v2191_v8  ;;  %1649 = vst.sshfl [vmem:[#allocation2 + $0x4] sm:$0x3 pattern:$0x76325410] %v399_v60 }
 0x1d1   :  { %1650 = vst.sshfl [vmem:[#allocation2 + $0x1c] sm:$0x3 pattern:$0x76325410] %v1647_v61 }
 0x1d2   :  { %450 = vst [vmem:[#allocation2 + $0x40] sm:$0x3] %v435_v62  ;;  %452 = vst [vmem:[#allocation2 + $0x58] sm:$0x3] %v436_v63  ;;  %v418_v2 = vcombine.high %v410_v0, %v410_v0  ;;  %v419_v5 = vcombine.high %v417_v1, %v417_v1 }
 0x1d4   :  { %446 = vst [vmem:[#allocation2 + $0x10] sm:$0x3] %v418_v2  ;;  %448 = vst [vmem:[#allocation2 + $0x28] sm:$0x3] %v419_v5 }
 0x1d5   :  { %v2041_v17 = vld [vmem:[#allocation2 + $0x30] sm:$0x3f]  }
 0x1d6   :  { %v677_v18 = vsel %vm483_vm1, %v2041_v17, 0  ;;  %v2043_v21 = vld [vmem:[#allocation2 + $0x48] sm:$0x3f]  }
 0x1d7   :  { %v2037_v6 = vld [vmem:[#allocation2] sm:$0x3f]   ;;  %v773_v23 = vsel %vm483_vm1, %v2043_v21, 0 }
 0x1d8   :  { %v485_v10 = vsel %vm483_vm1, %v2037_v6, 0  ;;  %v2039_v11 = vld [vmem:[#allocation2 + $0x18] sm:$0x3f]  }
 0x1d9   :  { %1858 = vmatpush3.bf16.msra.mxu0 %v485_v10  ;;  %v581_v14 = vsel %vm483_vm1, %v2039_v11, 0  ;;  %v2042_v19 = vld [vmem:[#allocation2 + $0x3c] sm:$0x3f]   ;;  %v2044_v27 = vld [vmem:[#allocation2 + $0x54] sm:$0x3f]  }
 0x1da   :  { %1869 = vmatprep.subr.bf16.mxu0 %v2132_v48  ;;  %v725_v20 = vsel %vm483_vm1, %v2042_v19, 0  ;;  %v821_v28 = vsel %vm483_vm1, %v2044_v27, 0 }
 0x1db   :  { %v2038_v8 = vld [vmem:[#allocation2 + $0xc] sm:$0x3f]   ;;  %v2040_v15 = vld [vmem:[#allocation2 + $0x24] sm:$0x3f]  }
 0x1dc   :  { %1860 = vmatmul.mubr.msk.bf16.vlgmr.msra.gmra.mxu0 %vm479_vm2, %v73_v12  ;;  %v533_v13 = vsel %vm483_vm1, %v2038_v8, 0  ;;  %v629_v16 = vsel %vm483_vm1, %v2040_v15, 0 }
 0x1dd   :  { %1864 = vmatpush3.bf16.msra.mxu1 %v533_v13  ;;  %1870 = vmatpush3.bf16.msra.mxu0 %v581_v14 }
 0x1de   :  { %1875 = vmatprep.subr.bf16.mxu1 %v2132_v48  ;;  %1871 = vmatprep.mubr.msk.bf16.mxu0 %vm2133_vm0, %v2132_v48 }
 0x1df   :  { %1881 = vmatprep.subr.bf16.mxu0 %v2132_v48 }
 0x1e0   :  { %1866 = vmatmul.mubr.msk.bf16.vlgmr.msra.gmra.mxu1 %vm479_vm2, %v73_v12 }
 0x1e1   :  { %1876 = vmatpush3.bf16.msra.mxu1 %v629_v16  ;;  %1877 = vmatprep.mubr.msk.bf16.mxu1 %vm2133_vm0, %v2132_v48 }
 0x1e2   :  { %1887 = vmatprep.subr.bf16.mxu1 %v2132_v48 }
 0x1e4   :  { %1872 = vmatmul.mubr.msk.bf16.vlgmr.msra.gmra.mxu0 %vm479_vm2, %v73_v12 }
 0x1e5   :  { %1882 = vmatpush3.bf16.msra.mxu0 %v677_v18  ;;  %1883 = vmatprep.mubr.msk.bf16.mxu0 %vm2133_vm0, %v2132_v48 }
 0x1e6   :  { %1893 = vmatprep.subr.bf16.mxu0 %v2132_v48 }
 0x1e8   :  { %1878 = vmatmul.mubr.msk.bf16.vlgmr.msra.gmra.mxu1 %vm479_vm2, %v73_v12 }
 0x1e9   :  { %1888 = vmatpush3.bf16.msra.mxu1 %v725_v20  ;;  %1889 = vmatprep.mubr.msk.bf16.mxu1 %vm2133_vm0, %v2132_v48 }
 0x1ea   :  { %1899 = vmatprep.subr.bf16.mxu1 %v2132_v48 }
 0x1ec   :  { %1884 = vmatmul.mubr.msk.bf16.vlgmr.msra.gmra.mxu0 %vm479_vm2, %v73_v12 }
 0x1ed   :  { %1894 = vmatpush3.bf16.msra.mxu0 %v773_v23  ;;  %1895 = vmatprep.mubr.msk.bf16.mxu0 %vm2133_vm0, %v2132_v48 }
 0x1ee   :  { %1905 = vmatprep.subr.bf16.mxu0 %v2179_v3 }
 0x1f0   :  { %1890 = vmatmul.mubr.msk.bf16.vlgmr.msra.gmra.mxu1 %vm479_vm2, %v73_v12 }
 0x1f1   :  { %1900 = vmatpush3.bf16.msra.mxu1 %v821_v28  ;;  %1901 = vmatprep.mubr.msk.bf16.mxu1 %vm2133_vm0, %v2132_v48 }
 0x1f2   :  { %1929 = vmatprep.subr.bf16.mxu1 %v2179_v3 }
 0x1f4   :  { %1896 = vmatmul.mubr.msk.bf16.vlgmr.msra.gmra.mxu0 %vm479_vm2, %v73_v12 }
 0x1f5   :  { %1906 = vmatpush3.bf16.msra.mxu0 %v2179_v3 }
 0x1f6   :  { %1907 = vmatprep.subr.bf16.mxu0 %v2181_v4 }
 0x1f8   :  { %1902 = vmatmul.mubr.msk.bf16.vlgmr.msra.gmra.mxu1 %vm479_vm2, %v73_v12 }
 0x1f9   :  { %1908 = vmatpush3.bf16.msra.mxu0 %v2181_v4  ;;  %1930 = vmatpush3.bf16.msra.mxu1 %v2179_v3  ;;  %v472_v3 = vpop.permute.xlu0 %471 }
 0x1fa   :  { %1909 = vmatprep.subr.bf16.mxu0 %v2188_v7  ;;  %1931 = vmatprep.subr.bf16.mxu1 %v2181_v4 }
 0x1fd   :  { %1910 = vmatpush3.bf16.msra.mxu0 %v2188_v7  ;;  %1932 = vmatpush3.bf16.msra.mxu1 %v2181_v4 }
 0x1fe   :  { %1911 = vmatprep.subr.bf16.mxu0 %v2194_v9  ;;  %1933 = vmatprep.subr.bf16.mxu1 %v2188_v7 }
 0x201   :  { %1912 = vmatpush3.bf16.msra.mxu0 %v2194_v9  ;;  %1934 = vmatpush3.bf16.msra.mxu1 %v2188_v7 }
 0x202   :  { %1913 = vmatprep.subr.bf16.mxu0 %v2205_v22  ;;  %1935 = vmatprep.subr.bf16.mxu1 %v2194_v9 }
 0x205   :  { %1914 = vmatpush3.bf16.msra.mxu0 %v2205_v22  ;;  %1936 = vmatpush3.bf16.msra.mxu1 %v2194_v9 }
 0x206   :  { %1915 = vmatprep.subr.bf16.mxu0 %v2211_v24  ;;  %1937 = vmatprep.subr.bf16.mxu1 %v2205_v22 }
 0x209   :  { %1916 = vmatpush3.bf16.msra.mxu0 %v2211_v24  ;;  %1938 = vmatpush3.bf16.msra.mxu1 %v2205_v22 }
 0x20a   :  { %1917 = vmatprep.subr.bf16.mxu0 %v2217_v25  ;;  %1939 = vmatprep.subr.bf16.mxu1 %v2211_v24 }
 0x20d   :  { %1918 = vmatpush3.bf16.msra.mxu0 %v2217_v25  ;;  %1940 = vmatpush3.bf16.msra.mxu1 %v2211_v24 }
 0x20e   :  { %1919 = vmatprep.subr.bf16.mxu0 %v2223_v26  ;;  %1941 = vmatprep.subr.bf16.mxu1 %v2217_v25 }
 0x211   :  { %1920 = vmatpush3.bf16.msra.mxu0 %v2223_v26  ;;  %1942 = vmatpush3.bf16.msra.mxu1 %v2217_v25 }
 0x212   :  { %1943 = vmatprep.subr.bf16.mxu1 %v2223_v26  ;;  %1953 = vmatprep.subr.bf16.mxu0 %v2132_v48 }
 0x215   :  { %1944 = vmatpush3.bf16.msra.mxu1 %v2223_v26 }
 0x216   :  { %1961 = vmatprep.subr.bf16.mxu1 %v2132_v48 }
 0x29c   :  { %v521_v4 = vpop.f32.mrf.mxu0 }
 0x29d   :  { %v522_v7 = vadd.f32 %v521_v4, %v472_v3 }
 0x29e   :  { %v1861_v9 = vpop.f32.mrf.mxu0 }
 0x29f   :  { %v863_v22 = vmax.f32 %v522_v7, 0.0 }
 0x2a0   :  { %v524_v24 = vpop.f32.mrf.mxu0  ;;  %v569_v29 = vpop.f32.mrf.mxu1 }
 0x2a1   :  { %v570_v30 = vadd.f32 %v569_v29, %v472_v3  ;;  %v871_v31 = vpack.c.bf16 %v863_v22, %v863_v22 }
 0x2a2   :  { %v1862_v32 = vpop.f32.mrf.mxu0  ;;  %v1867_v33 = vpop.f32.mrf.mxu1 }
 0x2a3   :  { %v864_v25 = vmax.f32 %v570_v30, 0.0  ;;  %881 = vst [vmem:[#allocation2] sm:$0xf] %v871_v31 }
 0x2a4   :  { %v572_v34 = vpop.f32.mrf.mxu1  ;;  %v617_v35 = vpop.f32.mrf.mxu0 }
 0x2a5   :  { %v872_v36 = vpack.c.bf16 %v864_v25, %v864_v25  ;;  %v1713_v37 = vpack.c.bf16 %v864_v25, %v863_v22  ;;  %v618_v26 = vadd.f32 %v617_v35, %v472_v3 }
 0x2a6   :  { %v1868_v38 = vpop.f32.mrf.mxu1  ;;  %v1873_v39 = vpop.f32.mrf.mxu0 }
 0x2a7   :  { %882 = vst [vmem:[#allocation2 + $0xc] sm:$0xf] %v872_v36  ;;  %v865_v40 = vmax.f32 %v618_v26, 0.0  ;;  %1921 = vmatprep.mubr.bf16.mxu0 %v1713_v37 }
 0x2a8   :  { %v620_v41 = vpop.f32.mrf.mxu0  ;;  %v665_v42 = vpop.f32.mrf.mxu1 }
 0x2a9   :  { %v873_v43 = vpack.c.bf16 %v865_v40, %v865_v40  ;;  %v666_v44 = vadd.f32 %v665_v42, %v472_v3 }
 0x2aa   :  { %v1874_v45 = vpop.f32.mrf.mxu0  ;;  %v1879_v46 = vpop.f32.mrf.mxu1 }
 0x2ab   :  { %883 = vst [vmem:[#allocation2 + $0x18] sm:$0xf] %v873_v43  ;;  %v866_v47 = vmax.f32 %v666_v44, 0.0 }
 0x2ac   :  { %v668_v49 = vpop.f32.mrf.mxu1  ;;  %v713_v50 = vpop.f32.mrf.mxu0 }
 0x2ad   :  { %v874_v51 = vpack.c.bf16 %v866_v47, %v866_v47  ;;  %v1714_v52 = vpack.c.bf16 %v866_v47, %v865_v40  ;;  %v714_v53 = vadd.f32 %v713_v50, %v472_v3 }
 0x2ae   :  { %v1880_v54 = vpop.f32.mrf.mxu1  ;;  %v1885_v55 = vpop.f32.mrf.mxu0 }
 0x2af   :  { %884 = vst [vmem:[#allocation2 + $0x24] sm:$0xf] %v874_v51  ;;  %v867_v56 = vmax.f32 %v714_v53, 0.0  ;;  %1922 = vmatmul.mubr.bf16.vlgmr.msra.gmra.mxu0 %v1714_v52 }
 0x2b0   :  { %v716_v57 = vpop.f32.mrf.mxu0  ;;  %v761_v58 = vpop.f32.mrf.mxu1 }
 0x2b1   :  { %v875_v59 = vpack.c.bf16 %v867_v56, %v867_v56  ;;  %v762_v60 = vadd.f32 %v761_v58, %v472_v3  ;;  %v2334_v58 = vld [vmem:[%s2390_s4] sm:$0x3]  ;;  %s2135_s4 = smov [#allocation8]  }
 0x2b2   :  { %v1886_v61 = vpop.f32.mrf.mxu0  ;;  %v1891_v62 = vpop.f32.mrf.mxu1  ;;  %s1606_s12 = sshll.u32 %s2135_s4, 4  ;;  %s1607_s12 = int_to_ptr.vmem [resolvable:$true] %s1606_s12 }
 0x2b3   :  { %885 = vst [vmem:[#allocation2 + $0x30] sm:$0xf] %v875_v59  ;;  %v868_v63 = vmax.f32 %v762_v60, 0.0  ;;  %s2101_s13 = scalar_lea.vmem %s1607_s12, 512  ;;  %p2106_p11 = scmp.lt.s32.totalorder %s1607_s12, %s1607_s12 }
 0x2b4   :  { %v764_v0 = vpop.f32.mrf.mxu1  ;;  %v809_v1 = vpop.f32.mrf.mxu0  ;;  %p2102_p10 = scmp.ne.s32.totalorder %s1607_s12, %s2101_s13  ;;  %p2107_p12 = scmp.lt.s32.totalorder %s2101_s13, %s2101_s13 }
 0x2b5   :  { %v876_v2 = vpack.c.bf16 %v868_v63, %v868_v63  ;;  %v1715_v5 = vpack.c.bf16 %v868_v63, %v867_v56  ;;  %v810_v6 = vadd.f32 %v809_v1, %v472_v3 }
 0x2b6   :  { %v1892_v10 = vpop.f32.mrf.mxu1  ;;  %v1897_v11 = vpop.f32.mrf.mxu0  ;;  %p2108_p13 = por %p2107_p12, %p2106_p11 }
 0x2b7   :  { %886 = vst [vmem:[#allocation2 + $0x3c] sm:$0xf] %v876_v2  ;;  %v869_v12 = vmax.f32 %v810_v6, 0.0  ;;  %1925 = vmatprep.mubr.bf16.mxu0 %v1715_v5 }
 0x2b8   :  { %v857_v8 = vpop.f32.mrf.mxu1  ;;  %v812_v13 = vpop.f32.mrf.mxu0  ;;  %p2109_p0 = pnand %p2108_p13, %p2102_p10 }
 0x2b9   :  { %v877_v14 = vpack.c.bf16 %v869_v12, %v869_v12  ;;  %v858_v15 = vadd.f32 %v857_v8, %v472_v3 }
 0x2ba   :  { %v1903_v16 = vpop.f32.mrf.mxu1  ;;  %v1898_v17 = vpop.f32.mrf.mxu0 }
 0x2bb   :  { %887 = vst [vmem:[#allocation2 + $0x48] sm:$0xf] %v877_v14  ;;  %v870_v18 = vmax.f32 %v858_v15, 0.0 }
 0x2bc   :  { %v860_v19 = vpop.f32.mrf.mxu1 }
 0x2bd   :  { %v878_v20 = vpack.c.bf16 %v870_v18, %v870_v18  ;;  %v1716_v21 = vpack.c.bf16 %v870_v18, %v869_v12 }
 0x2be   :  { %v1904_v23 = vpop.f32.mrf.mxu1 }
 0x2bf   :  { %888 = vst [vmem:[#allocation2 + $0x54] sm:$0xf] %v878_v20  ;;  %1926 = vmatmul.mubr.bf16.gmra.mxu0 %v1716_v21  ;;  %v1150_v23 = vpop.permute.xlu0 %1149 }
 0x2c0   :  { %1957 = vmatprep.mubr.msk.bf16.mxu0 %vm2133_vm0, %v2132_v48 }
 0x36f   :  { %v1923_v27 = vpop.f32.mrf.mxu0 }
 0x370   :  { %v1719_v28 = vpack.c.bf16 %v1923_v27, %v1923_v27 }
 0x371   :  { %v947_v4 = vpop.f32.mrf.mxu0 }
 0x372   :  { %1012 = vst [vmem:[#allocation2 + $0x1c] sm:$0xf] %v1719_v28  ;;  %v1717_v7 = vpack.c.bf16 %v947_v4, %v947_v4 }
 0x373   :  { %v1924_v9 = vpop.f32.mrf.mxu0 }
 0x374   :  { %1010 = vst [vmem:[#allocation2 + $0x4] sm:$0xf] %v1717_v7  ;;  %v1720_v3 = vpack.c.bf16 %v1924_v9, %v1924_v9  ;;  %v979_v30 = vpack.c.bf16 %v1924_v9, %v1923_v27 }
 0x375   :  { %v950_v22 = vpop.f32.mrf.mxu0 }
 0x376   :  { %1013 = vst [vmem:[#allocation2 + $0x28] sm:$0xf] %v1720_v3  ;;  %v978_v24 = vpack.c.bf16 %v950_v22, %v947_v4  ;;  %v1718_v29 = vpack.c.bf16 %v950_v22, %v950_v22 }
 0x378   :  { %1011 = vst [vmem:[#allocation2 + $0x10] sm:$0xf] %v1718_v29  ;;  %1945 = vmatprep.mubr.bf16.mxu1 %v978_v24 }
 0x379   :  { %1946 = vmatmul.mubr.bf16.vlgmr.msra.gmra.mxu1 %v979_v30  ;;  %v2050_v2 = vld [vmem:[#allocation2 + $0x18] sm:$0xff]  }
 0x37b   :  { %v2046_v53 = vld [vmem:[#allocation2] sm:$0xff]  }
 0x37d   :  { %v2052_v10 = vld [vmem:[#allocation2 + $0x24] sm:$0xff]  }
 0x37f   :  { %v1927_v31 = vpop.f32.mrf.mxu0  ;;  %v2048_v61 = vld [vmem:[#allocation2 + $0xc] sm:$0xff]  }
 0x380   :  { %v1723_v32 = vpack.c.bf16 %v1927_v31, %v1927_v31 }
 0x381   :  { %v963_v33 = vpop.f32.mrf.mxu0 }
 0x382   :  { %1016 = vst [vmem:[#allocation2 + $0x4c] sm:$0xf] %v1723_v32  ;;  %v1721_v25 = vpack.c.bf16 %v963_v33, %v963_v33 }
 0x383   :  { %v1928_v34 = vpop.f32.mrf.mxu0 }
 0x384   :  { %1014 = vst [vmem:[#allocation2 + $0x34] sm:$0xf] %v1721_v25  ;;  %v1724_v35 = vpack.c.bf16 %v1928_v34, %v1928_v34  ;;  %v981_v38 = vpack.c.bf16 %v1928_v34, %v1927_v31 }
 0x385   :  { %v966_v36 = vpop.f32.mrf.mxu0 }
 0x386   :  { %1017 = vst [vmem:[#allocation2 + $0x58] sm:$0xf] %v1724_v35  ;;  %v980_v37 = vpack.c.bf16 %v966_v36, %v963_v33  ;;  %v1722_v26 = vpack.c.bf16 %v966_v36, %v966_v36 }
 0x388   :  { %1015 = vst [vmem:[#allocation2 + $0x40] sm:$0xf] %v1722_v26  ;;  %1949 = vmatprep.mubr.bf16.mxu1 %v980_v37 }
 0x389   :  { %1950 = vmatmul.mubr.bf16.gmra.mxu1 %v981_v38  ;;  %v2058_v18 = vld [vmem:[#allocation2 + $0x48] sm:$0xff]  }
 0x38a   :  { %1965 = vmatprep.mubr.msk.bf16.mxu1 %vm2133_vm0, %v2132_v48 }
 0x38b   :  { %v2054_v8 = vld [vmem:[#allocation2 + $0x30] sm:$0xff]  }
 0x38d   :  { %v2060_v20 = vld [vmem:[#allocation2 + $0x54] sm:$0xff]  }
 0x38f   :  { %v2056_v15 = vld [vmem:[#allocation2 + $0x3c] sm:$0xff]  }
 0x439   :  { %v1947_v39 = vpop.f32.mrf.mxu1 }
 0x43a   :  { %v1727_v40 = vpack.c.bf16 %v1947_v39, %v1947_v39 }
 0x43b   :  { %v1052_v41 = vpop.f32.mrf.mxu1 }
 0x43c   :  { %1117 = vst [vmem:[#allocation2 + $0x20] sm:$0xf] %v1727_v40  ;;  %v1725_v42 = vpack.c.bf16 %v1052_v41, %v1052_v41 }
 0x43d   :  { %v1948_v43 = vpop.f32.mrf.mxu1 }
 0x43e   :  { %1115 = vst [vmem:[#allocation2 + $0x8] sm:$0xf] %v1725_v42  ;;  %v1728_v44 = vpack.c.bf16 %v1948_v43, %v1948_v43 }
 0x43f   :  { %v1055_v45 = vpop.f32.mrf.mxu1 }
 0x440   :  { %1118 = vst [vmem:[#allocation2 + $0x2c] sm:$0xf] %v1728_v44  ;;  %v1726_v46 = vpack.c.bf16 %v1055_v45, %v1055_v45 }
 0x442   :  { %1116 = vst [vmem:[#allocation2 + $0x14] sm:$0xf] %v1726_v46 }
 0x443   :  { %v2049_v56 = vld [vmem:[#allocation2 + $0x20] ss:$0 sps:$4 sm:$0xff]  }
 0x444   :  { %v1271_v63 = vsel %vm1165_vm3, %v2049_v56, 0 }
 0x445   :  { %v2045_v47 = vld [vmem:[#allocation2 + $0x8] ss:$0 sps:$4 sm:$0xff]  }
 0x446   :  { %v1167_v49 = vsel %vm1165_vm3, %v2045_v47, 0 }
 0x447   :  { %1954 = vmatpush3.bf16.msra.mxu0 %v1167_v49  ;;  %v2051_v0 = vld [vmem:[#allocation2 + $0x2c] ss:$0 sps:$4 sm:$0xff]  }
 0x448   :  { %1955 = vmatprep.subr.bf16.mxu0 %v2132_v48  ;;  %v1323_v5 = vsel %vm1165_vm3, %v2051_v0, 0 }
 0x449   :  { %v1951_v50 = vpop.f32.mrf.mxu1  ;;  %v2047_v51 = vld [vmem:[#allocation2 + $0x14] ss:$0 sps:$4 sm:$0xff]  }
 0x44a   :  { %v1731_v52 = vpack.c.bf16 %v1951_v50, %v1951_v50  ;;  %v1219_v55 = vsel %vm1165_vm3, %v2047_v51, 0 }
 0x44b   :  { %v1068_v54 = vpop.f32.mrf.mxu1  ;;  %1956 = vmatpush3.bf16.msra.mxu0 %v2046_v53  ;;  %1962 = vmatpush3.bf16.msra.mxu1 %v1219_v55 }
 0x44c   :  { %1121 = vst [vmem:[#allocation2 + $0x50] sm:$0xf] %v1731_v52  ;;  %v1729_v57 = vpack.c.bf16 %v1068_v54, %v1068_v54  ;;  %1963 = vmatprep.subr.bf16.mxu1 %v2132_v48  ;;  %1969 = vmatprep.subr.bf16.mxu0 %v2132_v48 }
 0x44d   :  { %v1952_v59 = vpop.f32.mrf.mxu1 }
 0x44e   :  { %1119 = vst [vmem:[#allocation2 + $0x38] sm:$0xf] %v1729_v57  ;;  %v1732_v60 = vpack.c.bf16 %v1952_v59, %v1952_v59  ;;  %1958 = vmatmul.mubr.msk.bf16.vlgmr.msra.gmra.mxu0 %vm1161_vm4, %v2334_v58 }
 0x44f   :  { %v1071_v62 = vpop.f32.mrf.mxu1  ;;  %1964 = vmatpush3.bf16.msra.mxu1 %v2048_v61  ;;  %1970 = vmatpush3.bf16.msra.mxu0 %v1271_v63 }
 0x450   :  { %1122 = vst [vmem:[#allocation2 + $0x5c] sm:$0xf] %v1732_v60  ;;  %v1730_v1 = vpack.c.bf16 %v1071_v62, %v1071_v62  ;;  %1971 = vmatprep.subr.bf16.mxu0 %v2132_v48  ;;  %1977 = vmatprep.subr.bf16.mxu1 %v2132_v48 }
 0x451   :  { %1973 = vmatprep.mubr.msk.bf16.mxu0 %vm2133_vm0, %v2132_v48 }
 0x452   :  { %1120 = vst [vmem:[#allocation2 + $0x44] sm:$0xf] %v1730_v1  ;;  %1966 = vmatmul.mubr.msk.bf16.vlgmr.msra.gmra.mxu1 %vm1161_vm4, %v2334_v58 }
 0x453   :  { %1972 = vmatpush3.bf16.msra.mxu0 %v2050_v2  ;;  %1978 = vmatpush3.bf16.msra.mxu1 %v1323_v5  ;;  %v2057_v14 = vld [vmem:[#allocation2 + $0x50] ss:$0 sps:$4 sm:$0xff]  }
 0x454   :  { %1979 = vmatprep.subr.bf16.mxu1 %v2132_v48  ;;  %1985 = vmatprep.subr.bf16.mxu0 %v2132_v48  ;;  %v1479_v16 = vsel %vm1165_vm3, %v2057_v14, 0 }
 0x455   :  { %v2053_v6 = vld [vmem:[#allocation2 + $0x38] ss:$0 sps:$4 sm:$0xff]   ;;  %1981 = vmatprep.mubr.msk.bf16.mxu1 %vm2133_vm0, %v2132_v48 }
 0x456   :  { %1974 = vmatmul.mubr.msk.bf16.vlgmr.msra.gmra.mxu0 %vm1161_vm4, %v2334_v58  ;;  %v1375_v11 = vsel %vm1165_vm3, %v2053_v6, 0 }
 0x457   :  { %1980 = vmatpush3.bf16.msra.mxu1 %v2052_v10  ;;  %1986 = vmatpush3.bf16.msra.mxu0 %v1375_v11  ;;  %v2059_v17 = vld [vmem:[#allocation2 + $0x5c] ss:$0 sps:$4 sm:$0xff]  }
 0x458   :  { %1987 = vmatprep.subr.bf16.mxu0 %v2132_v48  ;;  %1993 = vmatprep.subr.bf16.mxu1 %v2132_v48  ;;  %v1531_v19 = vsel %vm1165_vm3, %v2059_v17, 0 }
 0x459   :  { %v2055_v12 = vld [vmem:[#allocation2 + $0x44] ss:$0 sps:$4 sm:$0xff]   ;;  %1989 = vmatprep.mubr.msk.bf16.mxu0 %vm2133_vm0, %v2132_v48 }
 0x45a   :  { %1982 = vmatmul.mubr.msk.bf16.vlgmr.msra.gmra.mxu1 %vm1161_vm4, %v2334_v58  ;;  %v1427_v13 = vsel %vm1165_vm3, %v2055_v12, 0 }
 0x45b   :  { %1988 = vmatpush3.bf16.msra.mxu0 %v2054_v8  ;;  %1994 = vmatpush3.bf16.msra.mxu1 %v1427_v13 }
 0x45c   :  { %1995 = vmatprep.subr.bf16.mxu1 %v2132_v48  ;;  %2001 = vmatprep.subr.bf16.mxu0 %v2132_v48 }
 0x45d   :  { %1997 = vmatprep.mubr.msk.bf16.mxu1 %vm2133_vm0, %v2132_v48 }
 0x45e   :  { %1990 = vmatmul.mubr.msk.bf16.vlgmr.msra.gmra.mxu0 %vm1161_vm4, %v2334_v58 }
 0x45f   :  { %1996 = vmatpush3.bf16.msra.mxu1 %v2056_v15  ;;  %2002 = vmatpush3.bf16.msra.mxu0 %v1479_v16 }
 0x460   :  { %2003 = vmatprep.subr.bf16.mxu0 %v2132_v48  ;;  %2009 = vmatprep.subr.bf16.mxu1 %v2132_v48 }
 0x461   :  { %2005 = vmatprep.mubr.msk.bf16.mxu0 %vm2133_vm0, %v2132_v48 }
 0x462   :  { %1998 = vmatmul.mubr.msk.bf16.vlgmr.msra.gmra.mxu1 %vm1161_vm4, %v2334_v58 }
 0x463   :  { %2004 = vmatpush3.bf16.msra.mxu0 %v2058_v18  ;;  %2010 = vmatpush3.bf16.msra.mxu1 %v1531_v19 }
 0x464   :  { %2011 = vmatprep.subr.bf16.mxu1 %v2132_v48  ;;  %2013 = vmatprep.mubr.msk.bf16.mxu1 %vm2133_vm0, %v2132_v48 }
 0x466   :  { %2006 = vmatmul.mubr.msk.bf16.vlgmr.msra.gmra.mxu0 %vm1161_vm4, %v2334_v58 }
 0x467   :  { %2012 = vmatpush3.bf16.msra.mxu1 %v2060_v20 }
 0x46a   :  { %2014 = vmatmul.mubr.msk.bf16.vlgmr.msra.gmra.mxu1 %vm1161_vm4, %v2334_v58 }
 0x50e   :  { %v1203_v21 = vpop.f32.mrf.mxu0 }
 0x50f   :  { %v1204_v28 = vadd.f32 %v1203_v21, %v1150_v23 }
 0x510   :  { %v1959_v27 = vpop.f32.mrf.mxu0 }
 0x511   :  { %v1573_v24 = vmax.f32 %v1204_v28, 0.0 }
 0x512   :  { %v1206_v4 = vpop.f32.mrf.mxu0  ;;  %v1255_v7 = vpop.f32.mrf.mxu1 }
 0x513   :  { %v1256_v9 = vadd.f32 %v1255_v7, %v1150_v23 }
 0x514   :  { %v1960_v3 = vpop.f32.mrf.mxu0  ;;  %v1967_v22 = vpop.f32.mrf.mxu1 }
 0x515   :  { %v1574_v29 = vmax.f32 %v1256_v9, 0.0 }
 0x516   :  { %v1258_v48 = vpop.f32.mrf.mxu1  ;;  %v1307_v30 = vpop.f32.mrf.mxu0 }
 0x517   :  { %v1589_v31 = vcombine.low %v1573_v24, %v1574_v29  ;;  %v1308_v25 = vadd.f32 %v1307_v30, %v1150_v23 }
 0x518   :  { %v1968_v32 = vpop.f32.mrf.mxu1  ;;  %v1975_v33 = vpop.f32.mrf.mxu0 }
 0x519   :  { %1597 = vst [vmem:[#allocation8] sm:$0xff] %v1589_v31  ;;  %v1575_v38 = vmax.f32 %v1308_v25, 0.0 }
 0x51a   :  { %v1310_v34 = vpop.f32.mrf.mxu0  ;;  %v1359_v35 = vpop.f32.mrf.mxu1 }
 0x51b   :  { %v1360_v36 = vadd.f32 %v1359_v35, %v1150_v23 }
 0x51c   :  { %v1976_v37 = vpop.f32.mrf.mxu0  ;;  %v1983_v26 = vpop.f32.mrf.mxu1 }
 0x51d   :  { %v1576_v39 = vmax.f32 %v1360_v36, 0.0 }
 0x51e   :  { %v1362_v40 = vpop.f32.mrf.mxu1  ;;  %v1411_v41 = vpop.f32.mrf.mxu0 }
 0x51f   :  { %v1590_v42 = vcombine.low %v1575_v38, %v1576_v39  ;;  %v1412_v45 = vadd.f32 %v1411_v41, %v1150_v23 }
 0x520   :  { %v1984_v43 = vpop.f32.mrf.mxu1  ;;  %v1991_v44 = vpop.f32.mrf.mxu0 }
 0x521   :  { %1598 = vst [vmem:[#allocation8 + $0x8] sm:$0xff] %v1590_v42  ;;  %v1577_v52 = vmax.f32 %v1412_v45, 0.0 }
 0x522   :  { %v1414_v46 = vpop.f32.mrf.mxu0  ;;  %v1463_v47 = vpop.f32.mrf.mxu1 }
 0x523   :  { %v1464_v49 = vadd.f32 %v1463_v47, %v1150_v23 }
 0x524   :  { %v1992_v50 = vpop.f32.mrf.mxu0  ;;  %v1999_v51 = vpop.f32.mrf.mxu1 }
 0x525   :  { %v1578_v53 = vmax.f32 %v1464_v49, 0.0 }
 0x526   :  { %v1466_v54 = vpop.f32.mrf.mxu1  ;;  %v1515_v55 = vpop.f32.mrf.mxu0 }
 0x527   :  { %v1591_v56 = vcombine.low %v1577_v52, %v1578_v53  ;;  %v1516_v59 = vadd.f32 %v1515_v55, %v1150_v23 }
 0x528   :  { %v2000_v57 = vpop.f32.mrf.mxu1  ;;  %v2007_v58 = vpop.f32.mrf.mxu0 }
 0x529   :  { %1599 = vst [vmem:[#allocation8 + $0x10] sm:$0xff] %v1591_v56  ;;  %v1579_v1 = vmax.f32 %v1516_v59, 0.0 }
 0x52a   :  { %v1567_v60 = vpop.f32.mrf.mxu1  ;;  %v1518_v61 = vpop.f32.mrf.mxu0 }
 0x52b   :  { %v1568_v62 = vadd.f32 %v1567_v60, %v1150_v23 }
 0x52c   :  { %v2015_v63 = vpop.f32.mrf.mxu1  ;;  %v2008_v0 = vpop.f32.mrf.mxu0 }
 0x52d   :  { %v1580_v2 = vmax.f32 %v1568_v62, 0.0 }
 0x52e   :  { %v1570_v5 = vpop.f32.mrf.mxu1 }
 0x52f   :  { %v1592_v6 = vcombine.low %v1579_v1, %v1580_v2 }
 0x530   :  { %v2016_v10 = vpop.f32.mrf.mxu1 }
 0x531   :  { %1600 = vst [vmem:[#allocation8 + $0x18] sm:$0xff] %v1592_v6 }
 0x532   :  { %2112 = shalt.err (!%p2109_p0)
}
 0x533   :  { %s2136_s14 = smov 128   ;;  %s2137_s15 = smov 8  }
 0x534   :  { %1612 = dma.vmem_to_hbm [thread:$0]  %s1607_s12, 512, %s2392_s6, [#allocation5], %s2136_s14, %s2136_s14, %s2137_s15  }
 0x535   :  { %2125 = dma.done.wait [#allocation5], 512  }
 0x536   :  { %2126 = vsyncadd [#allocation5], 4294966784 }
 0x537   :  { %1616 = vsyncpa [#allocation4], 1 }
 0x538   :  { %1617 = vsyncpa [#allocation7], 1 }
 0x539   :  { %1618 = vsyncpa [#allocation5], 1 }

</bundles_post_ra>
